<compile_context>
chip_gen: v7x
topology: tpu7x:2x2x1
jax: 0.10.0
libtpu: 0.0.40
codegen_flags: <defaults>
</compile_context>

<pallas_src>
import math

import jax
import jax.numpy as jnp
from jax.experimental import pallas as pl
from jax.experimental.pallas import tpu as pltpu

# ---- config (mirrors the PyTorch `config` class) ----
HIDDEN = 128
NUM_HEADS = 4
HEAD_DIM = HIDDEN // NUM_HEADS            # 32
LN_EPS = 1e-12
SEQ = 8
BATCH = 2

# TODO(synk): nn.Dropout is implemented as identity (eval mode); stochastic
#             dropout has no deterministic PyTorch-matching Pallas path.


def albert_attention_kernel(
    x_ref,        # (B*S, H)       input hidden states, f32
    wqkv_ref,     # (H, 3H)        fused [Wq | Wk | Wv], [in, out], bf16
    bqkv_ref,     # (1, 3H)        f32
    wd_ref,       # (H, H)         dense, [in, out], bf16
    bd_ref,       # (1, H)         f32
    gamma_ref,    # (1, H)         LayerNorm weight, f32
    beta_ref,     # (1, H)         LayerNorm bias,   f32
    out_ref,      # (B*S, H)       f32
    probs_ref,    # (B*NH*S, S)    f32 (wrapper reshapes to (B, NH, S, S))
):
    BS, H = x_ref.shape
    NHS, S = probs_ref.shape
    B = BS // S
    NH = NHS // BS
    HD = H // NH

    x = x_ref[...]                                            # (B*S, H) f32

    # ---- fused QKV projection: bf16 MXU, f32 accumulate, f32 epilogue ----
    qkv = jnp.dot(x.astype(wqkv_ref.dtype), wqkv_ref[...],
                  preferred_element_type=jnp.float32) + bqkv_ref[...]  # (B*S, 3H) f32

    inv_sqrt_d = 1.0 / math.sqrt(HD)
    q = qkv[:, 0:H] * inv_sqrt_d            # fold 1/sqrt(d) into the query (f32)
    k = qkv[:, H:2 * H]
    v = qkv[:, 2 * H:3 * H]

    # ---- per-(batch, head) attention, fully unrolled static loop ----
    # No head stack / no lane-dim concatenates: per-head results are either
    # written as probs rows (row-major slab) or consumed by the per-head
    # dense projection below, whose accumulator is lane-dense (H = 128).
    probs_blocks = []                       # b-major, then h: (S, S) each
    ctx_blocks = [[] for _ in range(NH)]    # per head: list over b of (S, HD)

    for b in range(B):
        r0 = b * S
        for h in range(NH):
            c0 = h * HD
            q_bh = q[r0:r0 + S, c0:c0 + HD]                   # (S, HD) f32
            k_bh = k[r0:r0 + S, c0:c0 + HD]
            v_bh = v[r0:r0 + S, c0:c0 + HD]

            # scores = q_bh @ k_bh.T without materializing a transpose
            scores = jax.lax.dot_general(
                q_bh, k_bh, (((1,), (1,)), ((), ())),
                preferred_element_type=jnp.float32)           # (S, S)

            # numerically stable softmax (f32); reciprocal -> EUP slot
            m = jnp.max(scores, axis=-1, keepdims=True)
            e = jnp.exp(scores - m)
            denom = jnp.sum(e, axis=-1, keepdims=True)
            p_bh = e * pl.reciprocal(denom, approx=False)     # (S, S)

            probs_blocks.append(p_bh)
            ctx_blocks[h].append(
                jnp.dot(p_bh, v_bh, preferred_element_type=jnp.float32))  # (S, HD)

    # single store of the probs slab; row order is (b, h, q) -> matches the
    # wrapper reshape to (B, NH, S, S).  Leading-axis concat only (cheap).
    probs_ref[...] = jnp.concatenate(probs_blocks, axis=0)

    # ---- output dense projection, decomposed per head ----
    #   context @ Wd == sum_h ctx_h @ Wd[h*HD:(h+1)*HD, :]
    # (== torch.einsum('bfnd,ndh->bfh', context, w)); accumulator is a
    # lane-dense (B*S, H) f32 value — the 32-lane contexts never get
    # re-packed into a (B*S, H) buffer.
    projected = jnp.zeros((BS, H), dtype=jnp.float32)
    for h in range(NH):
        ctx_h = jnp.concatenate(ctx_blocks[h], axis=0)        # (B*S, HD) f32, row concat
        wd_h = wd_ref[h * HD:(h + 1) * HD, :]                 # (HD, H) bf16
        projected = projected + jnp.dot(ctx_h.astype(wd_h.dtype), wd_h,
                                        preferred_element_type=jnp.float32)
    projected = projected + bd_ref[...]

    # ---- residual + LayerNorm (f32, biased variance, eps inside rsqrt) ----
    y = x + projected
    mean = jnp.mean(y, axis=-1, keepdims=True)
    var = jnp.mean((y - mean) ** 2, axis=-1, keepdims=True)
    out_ref[...] = ((y - mean) * jax.lax.rsqrt(var + LN_EPS)
                    * gamma_ref[...] + beta_ref[...])


@jax.jit
def albert_attention(x, wqkv, bqkv, wd, bd, gamma, beta):
    """x: (B, S, H) float32. wqkv: (H, 3H) fused [in, out] weight, bqkv: (1, 3H).
    wd: (H, H) [in, out]. Returns (layernormed_context, attention_probs)."""
    B, S, H = x.shape
    NH = NUM_HEADS
    x2d = x.reshape(B * S, H)

    # bf16 weights: halves weight HBM DMA and uses the bf16 MXU path.
    wqkv_bf16 = wqkv.astype(jnp.bfloat16)
    wd_bf16 = wd.astype(jnp.bfloat16)

    out2d, probs2d = pl.pallas_call(
        albert_attention_kernel,
        out_shape=(
            jax.ShapeDtypeStruct((B * S, H), jnp.float32),
            jax.ShapeDtypeStruct((B * NH * S, S), jnp.float32),
        ),
        grid_spec=pltpu.PrefetchScalarGridSpec(
            num_scalar_prefetch=0,
            grid=(1,),                                    # collapsed batch grid
            in_specs=[
                pl.BlockSpec((B * S, H), lambda i: (0, 0)),        # x
                pl.BlockSpec((H, 3 * H), lambda i: (0, 0)),        # fused QKV W (bf16)
                pl.BlockSpec((1, 3 * H), lambda i: (0, 0)),        # fused QKV b
                pl.BlockSpec((H, H), lambda i: (0, 0)),            # dense W (bf16)
                pl.BlockSpec((1, H), lambda i: (0, 0)),            # dense b
                pl.BlockSpec((1, H), lambda i: (0, 0)),            # LN gamma
                pl.BlockSpec((1, H), lambda i: (0, 0)),            # LN beta
            ],
            out_specs=[
                pl.BlockSpec((B * S, H), lambda i: (0, 0)),
                pl.BlockSpec((B * NH * S, S), lambda i: (0, 0)),
            ],
        ),
        compiler_params=pltpu.CompilerParams(
            dimension_semantics=("arbitrary",),
        ),
    )(x2d, wqkv_bf16, bqkv, wd_bf16, bd, gamma, beta)

    return out2d.reshape(B, S, H), probs2d.reshape(B, NH, S, S)


def _reference(x, wq, bq, wk, bk, wv, bv, wd, bd, gamma, beta):
    """Pure-JAX f32 reference mirroring the PyTorch forward (dropout = identity)."""
    B, S, H = x.shape
    q = x @ wq + bq
    k = x @ wk + bk
    v = x @ wv + bv

    def split(t):
        return t.reshape(B, S, NUM_HEADS, HEAD_DIM).transpose(0, 2, 1, 3)

    qh, kh, vh = split(q), split(k), split(v)
    scores = jnp.einsum('bhqd,bhkd->bhqk', qh, kh) / math.sqrt(HEAD_DIM)
    probs = jax.nn.softmax(scores, axis=-1)
    ctx = jnp.einsum('bhqk,bhkd->bhqd', probs, vh)
    ctx = ctx.transpose(0, 2, 1, 3).reshape(B, S, H)
    proj = ctx @ wd + bd
    y = x + proj
    mean = jnp.mean(y, axis=-1, keepdims=True)
    var = jnp.mean((y - mean) ** 2, axis=-1, keepdims=True)
    out = (y - mean) * jax.lax.rsqrt(var + LN_EPS) * gamma + beta
    return out, probs


if __name__ == "__main__":
    key = jax.random.PRNGKey(0)
    keys = jax.random.split(key, 12)

    x = jax.random.normal(keys[0], (BATCH, SEQ, HIDDEN), dtype=jnp.float32)

    # PyTorch Linear weight is [out, in]; we store transposed [in, out] so the
    # kernel can do x @ W directly.
    init = lambda k, shape: jax.random.normal(k, shape, dtype=jnp.float32) * 0.02
    wq = init(keys[1], (HIDDEN, HIDDEN))
    wk = init(keys[2], (HIDDEN, HIDDEN))
    wv = init(keys[3], (HIDDEN, HIDDEN))
    wd = init(keys[4], (HIDDEN, HIDDEN))
    bq = init(keys[5], (1, HIDDEN))
    bk = init(keys[6], (1, HIDDEN))
    bv = init(keys[7], (1, HIDDEN))
    bd = init(keys[8], (1, HIDDEN))
    gamma = 1.0 + init(keys[9], (1, HIDDEN))
    beta = init(keys[10], (1, HIDDEN))

    # One-time fusion of the QKV projections (done outside the kernel).
    wqkv = jnp.concatenate([wq, wk, wv], axis=1)     # (H, 3H)
    bqkv = jnp.concatenate([bq, bk, bv], axis=1)     # (1, 3H)

    out_ln, out_probs = albert_attention(x, wqkv, bqkv, wd, bd, gamma, beta)
    jax.block_until_ready((out_ln, out_probs))

    ref_ln, ref_probs = _reference(x, wq, bq, wk, bk, wv, bv, wd, bd,
                                   gamma, beta)
    assert out_ln.shape == (BATCH, SEQ, HIDDEN)
    assert out_probs.shape == (BATCH, NUM_HEADS, SEQ, SEQ)
    # Tolerances loosened for bf16 weight matmuls (kernel) vs f32 reference.
    assert jnp.allclose(out_ln, ref_ln, atol=2e-2, rtol=2e-2)
    assert jnp.allclose(out_probs, ref_probs, atol=2e-2, rtol=2e-2)

    print("KERNEL_OK")
</pallas_src>

<mosaic_0001>
module attributes {stable_mosaic.version = 11 : i64} {
  func.func @albert_attention_kernel(%arg0: i32, %arg1: memref<16x128xf32, #tpu.memory_space<vmem>>, %arg2: memref<128x384xbf16, #tpu.memory_space<vmem>>, %arg3: memref<1x384xf32, #tpu.memory_space<vmem>>, %arg4: memref<128x128xbf16, #tpu.memory_space<vmem>>, %arg5: memref<1x128xf32, #tpu.memory_space<vmem>>, %arg6: memref<1x128xf32, #tpu.memory_space<vmem>>, %arg7: memref<1x128xf32, #tpu.memory_space<vmem>>, %arg8: memref<16x128xf32, #tpu.memory_space<vmem>>, %arg9: memref<64x8xf32, #tpu.memory_space<vmem>>) attributes {dimension_semantics = [#tpu.dimension_semantics<arbitrary>], iteration_bounds = array<i64: 1>, scalar_prefetch = 0 : i64, scratch_operands = 0 : i64, tpu.core_type = #tpu.core_type<tc>, window_params = [{pipeline_mode = #tpu.pipeline_mode<synchronous>, transform_indices = @transform_0, window_bounds = array<i64: 16, 128>}, {pipeline_mode = #tpu.pipeline_mode<synchronous>, transform_indices = @transform_1, window_bounds = array<i64: 128, 384>}, {pipeline_mode = #tpu.pipeline_mode<synchronous>, transform_indices = @transform_2, window_bounds = array<i64: 1, 384>}, {pipeline_mode = #tpu.pipeline_mode<synchronous>, transform_indices = @transform_3, window_bounds = array<i64: 128, 128>}, {pipeline_mode = #tpu.pipeline_mode<synchronous>, transform_indices = @transform_4, window_bounds = array<i64: 1, 128>}, {pipeline_mode = #tpu.pipeline_mode<synchronous>, transform_indices = @transform_5, window_bounds = array<i64: 1, 128>}, {pipeline_mode = #tpu.pipeline_mode<synchronous>, transform_indices = @transform_6, window_bounds = array<i64: 1, 128>}, {pipeline_mode = #tpu.pipeline_mode<synchronous>, transform_indices = @transform_7, window_bounds = array<i64: 16, 128>}, {pipeline_mode = #tpu.pipeline_mode<synchronous>, transform_indices = @transform_8, window_bounds = array<i64: 64, 8>}]} {
    %c0 = arith.constant 0 : index
    %c0_0 = arith.constant 0 : index
    %0 = vector.load %arg1[%c0, %c0_0] : memref<16x128xf32, #tpu.memory_space<vmem>>, vector<16x128xf32>
    %1 = arith.truncf %0 : vector<16x128xf32> to vector<16x128xbf16>
    %c0_1 = arith.constant 0 : index
    %c0_2 = arith.constant 0 : index
    %2 = vector.load %arg2[%c0_1, %c0_2] : memref<128x384xbf16, #tpu.memory_space<vmem>>, vector<128x384xbf16>
    %cst = arith.constant dense<0.000000e+00> : vector<16x384xf32>
    %3 = tpu.matmul %1, %2, %cst {dimension_numbers = #tpu.dot_dimension_numbers<[1], [0], [0], [1], [0, 0, 1, 1], [], []>} : vector<16x128xbf16>, vector<128x384xbf16>, vector<16x384xf32> -> vector<16x384xf32>
    %c0_3 = arith.constant 0 : index
    %c0_4 = arith.constant 0 : index
    %4 = vector.load %arg3[%c0_3, %c0_4] : memref<1x384xf32, #tpu.memory_space<vmem>>, vector<1x384xf32>
    %5 = vector.broadcast %4 : vector<1x384xf32> to vector<16x384xf32>
    %6 = arith.addf %3, %5 : vector<16x384xf32>
    %7 = vector.extract_strided_slice %6 {offsets = [0, 0], sizes = [16, 128], strides = [1, 1]} : vector<16x384xf32> to vector<16x128xf32>
    %cst_5 = arith.constant 0.176776692 : f32
    %8 = vector.broadcast %cst_5 : f32 to vector<16x128xf32>
    %9 = arith.mulf %7, %8 : vector<16x128xf32>
    %10 = vector.extract_strided_slice %6 {offsets = [0, 128], sizes = [16, 128], strides = [1, 1]} : vector<16x384xf32> to vector<16x128xf32>
    %11 = vector.extract_strided_slice %6 {offsets = [0, 256], sizes = [16, 128], strides = [1, 1]} : vector<16x384xf32> to vector<16x128xf32>
    %12 = vector.extract_strided_slice %9 {offsets = [0, 0], sizes = [8, 32], strides = [1, 1]} : vector<16x128xf32> to vector<8x32xf32>
    %13 = vector.extract_strided_slice %10 {offsets = [0, 0], sizes = [8, 32], strides = [1, 1]} : vector<16x128xf32> to vector<8x32xf32>
    %14 = vector.extract_strided_slice %11 {offsets = [0, 0], sizes = [8, 32], strides = [1, 1]} : vector<16x128xf32> to vector<8x32xf32>
    %cst_6 = arith.constant dense<0.000000e+00> : vector<8x8xf32>
    %15 = tpu.matmul %12, %13, %cst_6 {dimension_numbers = #tpu.dot_dimension_numbers<[1], [1], [0], [0], [0, 0, 1, 0], [], []>} : vector<8x32xf32>, vector<8x32xf32>, vector<8x8xf32> -> vector<8x8xf32>
    %cst_7 = arith.constant dense<0xFF800000> : vector<8xf32>
    %16 = vector.multi_reduction <maximumf>, %15, %cst_7 [1] : vector<8x8xf32> to vector<8xf32>
    %17 = vector.shape_cast %16 : vector<8xf32> to vector<8x1xf32>
    %18 = vector.broadcast %17 : vector<8x1xf32> to vector<8x8xf32>
    %19 = arith.subf %15, %18 : vector<8x8xf32>
    %20 = math.exp %19 : vector<8x8xf32>
    %cst_8 = arith.constant dense<0.000000e+00> : vector<8xf32>
    %21 = vector.multi_reduction <add>, %20, %cst_8 [1] : vector<8x8xf32> to vector<8xf32>
    %22 = vector.shape_cast %21 : vector<8xf32> to vector<8x1xf32>
    %23 = tpu.reciprocal %22 : vector<8x1xf32> -> vector<8x1xf32>
    %24 = vector.broadcast %23 : vector<8x1xf32> to vector<8x8xf32>
    %25 = arith.mulf %20, %24 : vector<8x8xf32>
    %cst_9 = arith.constant dense<0.000000e+00> : vector<8x32xf32>
    %26 = tpu.matmul %25, %14, %cst_9 {dimension_numbers = #tpu.dot_dimension_numbers<[1], [0], [0], [1], [0, 0, 1, 1], [], []>} : vector<8x8xf32>, vector<8x32xf32>, vector<8x32xf32> -> vector<8x32xf32>
    %27 = vector.extract_strided_slice %9 {offsets = [0, 32], sizes = [8, 32], strides = [1, 1]} : vector<16x128xf32> to vector<8x32xf32>
    %28 = vector.extract_strided_slice %10 {offsets = [0, 32], sizes = [8, 32], strides = [1, 1]} : vector<16x128xf32> to vector<8x32xf32>
    %29 = vector.extract_strided_slice %11 {offsets = [0, 32], sizes = [8, 32], strides = [1, 1]} : vector<16x128xf32> to vector<8x32xf32>
    %cst_10 = arith.constant dense<0.000000e+00> : vector<8x8xf32>
    %30 = tpu.matmul %27, %28, %cst_10 {dimension_numbers = #tpu.dot_dimension_numbers<[1], [1], [0], [0], [0, 0, 1, 0], [], []>} : vector<8x32xf32>, vector<8x32xf32>, vector<8x8xf32> -> vector<8x8xf32>
    %cst_11 = arith.constant dense<0xFF800000> : vector<8xf32>
    %31 = vector.multi_reduction <maximumf>, %30, %cst_11 [1] : vector<8x8xf32> to vector<8xf32>
    %32 = vector.shape_cast %31 : vector<8xf32> to vector<8x1xf32>
    %33 = vector.broadcast %32 : vector<8x1xf32> to vector<8x8xf32>
    %34 = arith.subf %30, %33 : vector<8x8xf32>
    %35 = math.exp %34 : vector<8x8xf32>
    %cst_12 = arith.constant dense<0.000000e+00> : vector<8xf32>
    %36 = vector.multi_reduction <add>, %35, %cst_12 [1] : vector<8x8xf32> to vector<8xf32>
    %37 = vector.shape_cast %36 : vector<8xf32> to vector<8x1xf32>
    %38 = tpu.reciprocal %37 : vector<8x1xf32> -> vector<8x1xf32>
    %39 = vector.broadcast %38 : vector<8x1xf32> to vector<8x8xf32>
    %40 = arith.mulf %35, %39 : vector<8x8xf32>
    %cst_13 = arith.constant dense<0.000000e+00> : vector<8x32xf32>
    %41 = tpu.matmul %40, %29, %cst_13 {dimension_numbers = #tpu.dot_dimension_numbers<[1], [0], [0], [1], [0, 0, 1, 1], [], []>} : vector<8x8xf32>, vector<8x32xf32>, vector<8x32xf32> -> vector<8x32xf32>
    %42 = vector.extract_strided_slice %9 {offsets = [0, 64], sizes = [8, 32], strides = [1, 1]} : vector<16x128xf32> to vector<8x32xf32>
    %43 = vector.extract_strided_slice %10 {offsets = [0, 64], sizes = [8, 32], strides = [1, 1]} : vector<16x128xf32> to vector<8x32xf32>
    %44 = vector.extract_strided_slice %11 {offsets = [0, 64], sizes = [8, 32], strides = [1, 1]} : vector<16x128xf32> to vector<8x32xf32>
    %cst_14 = arith.constant dense<0.000000e+00> : vector<8x8xf32>
    %45 = tpu.matmul %42, %43, %cst_14 {dimension_numbers = #tpu.dot_dimension_numbers<[1], [1], [0], [0], [0, 0, 1, 0], [], []>} : vector<8x32xf32>, vector<8x32xf32>, vector<8x8xf32> -> vector<8x8xf32>
    %cst_15 = arith.constant dense<0xFF800000> : vector<8xf32>
    %46 = vector.multi_reduction <maximumf>, %45, %cst_15 [1] : vector<8x8xf32> to vector<8xf32>
    %47 = vector.shape_cast %46 : vector<8xf32> to vector<8x1xf32>
    %48 = vector.broadcast %47 : vector<8x1xf32> to vector<8x8xf32>
    %49 = arith.subf %45, %48 : vector<8x8xf32>
    %50 = math.exp %49 : vector<8x8xf32>
    %cst_16 = arith.constant dense<0.000000e+00> : vector<8xf32>
    %51 = vector.multi_reduction <add>, %50, %cst_16 [1] : vector<8x8xf32> to vector<8xf32>
    %52 = vector.shape_cast %51 : vector<8xf32> to vector<8x1xf32>
    %53 = tpu.reciprocal %52 : vector<8x1xf32> -> vector<8x1xf32>
    %54 = vector.broadcast %53 : vector<8x1xf32> to vector<8x8xf32>
    %55 = arith.mulf %50, %54 : vector<8x8xf32>
    %cst_17 = arith.constant dense<0.000000e+00> : vector<8x32xf32>
    %56 = tpu.matmul %55, %44, %cst_17 {dimension_numbers = #tpu.dot_dimension_numbers<[1], [0], [0], [1], [0, 0, 1, 1], [], []>} : vector<8x8xf32>, vector<8x32xf32>, vector<8x32xf32> -> vector<8x32xf32>
    %57 = vector.extract_strided_slice %9 {offsets = [0, 96], sizes = [8, 32], strides = [1, 1]} : vector<16x128xf32> to vector<8x32xf32>
    %58 = vector.extract_strided_slice %10 {offsets = [0, 96], sizes = [8, 32], strides = [1, 1]} : vector<16x128xf32> to vector<8x32xf32>
    %59 = vector.extract_strided_slice %11 {offsets = [0, 96], sizes = [8, 32], strides = [1, 1]} : vector<16x128xf32> to vector<8x32xf32>
    %cst_18 = arith.constant dense<0.000000e+00> : vector<8x8xf32>
    %60 = tpu.matmul %57, %58, %cst_18 {dimension_numbers = #tpu.dot_dimension_numbers<[1], [1], [0], [0], [0, 0, 1, 0], [], []>} : vector<8x32xf32>, vector<8x32xf32>, vector<8x8xf32> -> vector<8x8xf32>
    %cst_19 = arith.constant dense<0xFF800000> : vector<8xf32>
    %61 = vector.multi_reduction <maximumf>, %60, %cst_19 [1] : vector<8x8xf32> to vector<8xf32>
    %62 = vector.shape_cast %61 : vector<8xf32> to vector<8x1xf32>
    %63 = vector.broadcast %62 : vector<8x1xf32> to vector<8x8xf32>
    %64 = arith.subf %60, %63 : vector<8x8xf32>
    %65 = math.exp %64 : vector<8x8xf32>
    %cst_20 = arith.constant dense<0.000000e+00> : vector<8xf32>
    %66 = vector.multi_reduction <add>, %65, %cst_20 [1] : vector<8x8xf32> to vector<8xf32>
    %67 = vector.shape_cast %66 : vector<8xf32> to vector<8x1xf32>
    %68 = tpu.reciprocal %67 : vector<8x1xf32> -> vector<8x1xf32>
    %69 = vector.broadcast %68 : vector<8x1xf32> to vector<8x8xf32>
    %70 = arith.mulf %65, %69 : vector<8x8xf32>
    %cst_21 = arith.constant dense<0.000000e+00> : vector<8x32xf32>
    %71 = tpu.matmul %70, %59, %cst_21 {dimension_numbers = #tpu.dot_dimension_numbers<[1], [0], [0], [1], [0, 0, 1, 1], [], []>} : vector<8x8xf32>, vector<8x32xf32>, vector<8x32xf32> -> vector<8x32xf32>
    %72 = vector.extract_strided_slice %9 {offsets = [8, 0], sizes = [8, 32], strides = [1, 1]} : vector<16x128xf32> to vector<8x32xf32>
    %73 = vector.extract_strided_slice %10 {offsets = [8, 0], sizes = [8, 32], strides = [1, 1]} : vector<16x128xf32> to vector<8x32xf32>
    %74 = vector.extract_strided_slice %11 {offsets = [8, 0], sizes = [8, 32], strides = [1, 1]} : vector<16x128xf32> to vector<8x32xf32>
    %cst_22 = arith.constant dense<0.000000e+00> : vector<8x8xf32>
    %75 = tpu.matmul %72, %73, %cst_22 {dimension_numbers = #tpu.dot_dimension_numbers<[1], [1], [0], [0], [0, 0, 1, 0], [], []>} : vector<8x32xf32>, vector<8x32xf32>, vector<8x8xf32> -> vector<8x8xf32>
    %cst_23 = arith.constant dense<0xFF800000> : vector<8xf32>
    %76 = vector.multi_reduction <maximumf>, %75, %cst_23 [1] : vector<8x8xf32> to vector<8xf32>
    %77 = vector.shape_cast %76 : vector<8xf32> to vector<8x1xf32>
    %78 = vector.broadcast %77 : vector<8x1xf32> to vector<8x8xf32>
    %79 = arith.subf %75, %78 : vector<8x8xf32>
    %80 = math.exp %79 : vector<8x8xf32>
    %cst_24 = arith.constant dense<0.000000e+00> : vector<8xf32>
    %81 = vector.multi_reduction <add>, %80, %cst_24 [1] : vector<8x8xf32> to vector<8xf32>
    %82 = vector.shape_cast %81 : vector<8xf32> to vector<8x1xf32>
    %83 = tpu.reciprocal %82 : vector<8x1xf32> -> vector<8x1xf32>
    %84 = vector.broadcast %83 : vector<8x1xf32> to vector<8x8xf32>
    %85 = arith.mulf %80, %84 : vector<8x8xf32>
    %cst_25 = arith.constant dense<0.000000e+00> : vector<8x32xf32>
    %86 = tpu.matmul %85, %74, %cst_25 {dimension_numbers = #tpu.dot_dimension_numbers<[1], [0], [0], [1], [0, 0, 1, 1], [], []>} : vector<8x8xf32>, vector<8x32xf32>, vector<8x32xf32> -> vector<8x32xf32>
    %87 = vector.extract_strided_slice %9 {offsets = [8, 32], sizes = [8, 32], strides = [1, 1]} : vector<16x128xf32> to vector<8x32xf32>
    %88 = vector.extract_strided_slice %10 {offsets = [8, 32], sizes = [8, 32], strides = [1, 1]} : vector<16x128xf32> to vector<8x32xf32>
    %89 = vector.extract_strided_slice %11 {offsets = [8, 32], sizes = [8, 32], strides = [1, 1]} : vector<16x128xf32> to vector<8x32xf32>
    %cst_26 = arith.constant dense<0.000000e+00> : vector<8x8xf32>
    %90 = tpu.matmul %87, %88, %cst_26 {dimension_numbers = #tpu.dot_dimension_numbers<[1], [1], [0], [0], [0, 0, 1, 0], [], []>} : vector<8x32xf32>, vector<8x32xf32>, vector<8x8xf32> -> vector<8x8xf32>
    %cst_27 = arith.constant dense<0xFF800000> : vector<8xf32>
    %91 = vector.multi_reduction <maximumf>, %90, %cst_27 [1] : vector<8x8xf32> to vector<8xf32>
    %92 = vector.shape_cast %91 : vector<8xf32> to vector<8x1xf32>
    %93 = vector.broadcast %92 : vector<8x1xf32> to vector<8x8xf32>
    %94 = arith.subf %90, %93 : vector<8x8xf32>
    %95 = math.exp %94 : vector<8x8xf32>
    %cst_28 = arith.constant dense<0.000000e+00> : vector<8xf32>
    %96 = vector.multi_reduction <add>, %95, %cst_28 [1] : vector<8x8xf32> to vector<8xf32>
    %97 = vector.shape_cast %96 : vector<8xf32> to vector<8x1xf32>
    %98 = tpu.reciprocal %97 : vector<8x1xf32> -> vector<8x1xf32>
    %99 = vector.broadcast %98 : vector<8x1xf32> to vector<8x8xf32>
    %100 = arith.mulf %95, %99 : vector<8x8xf32>
    %cst_29 = arith.constant dense<0.000000e+00> : vector<8x32xf32>
    %101 = tpu.matmul %100, %89, %cst_29 {dimension_numbers = #tpu.dot_dimension_numbers<[1], [0], [0], [1], [0, 0, 1, 1], [], []>} : vector<8x8xf32>, vector<8x32xf32>, vector<8x32xf32> -> vector<8x32xf32>
    %102 = vector.extract_strided_slice %9 {offsets = [8, 64], sizes = [8, 32], strides = [1, 1]} : vector<16x128xf32> to vector<8x32xf32>
    %103 = vector.extract_strided_slice %10 {offsets = [8, 64], sizes = [8, 32], strides = [1, 1]} : vector<16x128xf32> to vector<8x32xf32>
    %104 = vector.extract_strided_slice %11 {offsets = [8, 64], sizes = [8, 32], strides = [1, 1]} : vector<16x128xf32> to vector<8x32xf32>
    %cst_30 = arith.constant dense<0.000000e+00> : vector<8x8xf32>
    %105 = tpu.matmul %102, %103, %cst_30 {dimension_numbers = #tpu.dot_dimension_numbers<[1], [1], [0], [0], [0, 0, 1, 0], [], []>} : vector<8x32xf32>, vector<8x32xf32>, vector<8x8xf32> -> vector<8x8xf32>
    %cst_31 = arith.constant dense<0xFF800000> : vector<8xf32>
    %106 = vector.multi_reduction <maximumf>, %105, %cst_31 [1] : vector<8x8xf32> to vector<8xf32>
    %107 = vector.shape_cast %106 : vector<8xf32> to vector<8x1xf32>
    %108 = vector.broadcast %107 : vector<8x1xf32> to vector<8x8xf32>
    %109 = arith.subf %105, %108 : vector<8x8xf32>
    %110 = math.exp %109 : vector<8x8xf32>
    %cst_32 = arith.constant dense<0.000000e+00> : vector<8xf32>
    %111 = vector.multi_reduction <add>, %110, %cst_32 [1] : vector<8x8xf32> to vector<8xf32>
    %112 = vector.shape_cast %111 : vector<8xf32> to vector<8x1xf32>
    %113 = tpu.reciprocal %112 : vector<8x1xf32> -> vector<8x1xf32>
    %114 = vector.broadcast %113 : vector<8x1xf32> to vector<8x8xf32>
    %115 = arith.mulf %110, %114 : vector<8x8xf32>
    %cst_33 = arith.constant dense<0.000000e+00> : vector<8x32xf32>
    %116 = tpu.matmul %115, %104, %cst_33 {dimension_numbers = #tpu.dot_dimension_numbers<[1], [0], [0], [1], [0, 0, 1, 1], [], []>} : vector<8x8xf32>, vector<8x32xf32>, vector<8x32xf32> -> vector<8x32xf32>
    %117 = vector.extract_strided_slice %9 {offsets = [8, 96], sizes = [8, 32], strides = [1, 1]} : vector<16x128xf32> to vector<8x32xf32>
    %118 = vector.extract_strided_slice %10 {offsets = [8, 96], sizes = [8, 32], strides = [1, 1]} : vector<16x128xf32> to vector<8x32xf32>
    %119 = vector.extract_strided_slice %11 {offsets = [8, 96], sizes = [8, 32], strides = [1, 1]} : vector<16x128xf32> to vector<8x32xf32>
    %cst_34 = arith.constant dense<0.000000e+00> : vector<8x8xf32>
    %120 = tpu.matmul %117, %118, %cst_34 {dimension_numbers = #tpu.dot_dimension_numbers<[1], [1], [0], [0], [0, 0, 1, 0], [], []>} : vector<8x32xf32>, vector<8x32xf32>, vector<8x8xf32> -> vector<8x8xf32>
    %cst_35 = arith.constant dense<0xFF800000> : vector<8xf32>
    %121 = vector.multi_reduction <maximumf>, %120, %cst_35 [1] : vector<8x8xf32> to vector<8xf32>
    %122 = vector.shape_cast %121 : vector<8xf32> to vector<8x1xf32>
    %123 = vector.broadcast %122 : vector<8x1xf32> to vector<8x8xf32>
    %124 = arith.subf %120, %123 : vector<8x8xf32>
    %125 = math.exp %124 : vector<8x8xf32>
    %cst_36 = arith.constant dense<0.000000e+00> : vector<8xf32>
    %126 = vector.multi_reduction <add>, %125, %cst_36 [1] : vector<8x8xf32> to vector<8xf32>
    %127 = vector.shape_cast %126 : vector<8xf32> to vector<8x1xf32>
    %128 = tpu.reciprocal %127 : vector<8x1xf32> -> vector<8x1xf32>
    %129 = vector.broadcast %128 : vector<8x1xf32> to vector<8x8xf32>
    %130 = arith.mulf %125, %129 : vector<8x8xf32>
    %cst_37 = arith.constant dense<0.000000e+00> : vector<8x32xf32>
    %131 = tpu.matmul %130, %119, %cst_37 {dimension_numbers = #tpu.dot_dimension_numbers<[1], [0], [0], [1], [0, 0, 1, 1], [], []>} : vector<8x8xf32>, vector<8x32xf32>, vector<8x32xf32> -> vector<8x32xf32>
    %132 = tpu.concatenate %25, %40, %55, %70, %85, %100, %115, %130 in 0 : vector<8x8xf32>, vector<8x8xf32>, vector<8x8xf32>, vector<8x8xf32>, vector<8x8xf32>, vector<8x8xf32>, vector<8x8xf32>, vector<8x8xf32> -> vector<64x8xf32>
    %c0_38 = arith.constant 0 : index
    %c0_39 = arith.constant 0 : index
    %133 = vector.load %arg9[%c0_38, %c0_39] : memref<64x8xf32, #tpu.memory_space<vmem>>, vector<64x8xf32>
    tpu.vector_store %arg9[%c0_38, %c0_39], %132 {strides = array<i32>} : memref<64x8xf32, #tpu.memory_space<vmem>>, vector<64x8xf32>,
    %cst_40 = arith.constant 0.000000e+00 : f32
    %134 = vector.broadcast %cst_40 : f32 to vector<16x128xf32>
    %135 = tpu.concatenate %26, %86 in 0 : vector<8x32xf32>, vector<8x32xf32> -> vector<16x32xf32>
    %c0_41 = arith.constant 0 : index
    %c0_42 = arith.constant 0 : index
    %136 = vector.load %arg4[%c0_41, %c0_42] : memref<128x128xbf16, #tpu.memory_space<vmem>>, vector<32x128xbf16>
    %137 = arith.truncf %135 : vector<16x32xf32> to vector<16x32xbf16>
    %cst_43 = arith.constant dense<0.000000e+00> : vector<16x128xf32>
    %138 = tpu.matmul %137, %136, %cst_43 {dimension_numbers = #tpu.dot_dimension_numbers<[1], [0], [0], [1], [0, 0, 1, 1], [], []>} : vector<16x32xbf16>, vector<32x128xbf16>, vector<16x128xf32> -> vector<16x128xf32>
    %139 = arith.addf %134, %138 : vector<16x128xf32>
    %140 = tpu.concatenate %41, %101 in 0 : vector<8x32xf32>, vector<8x32xf32> -> vector<16x32xf32>
    %c32 = arith.constant 32 : index
    %c0_44 = arith.constant 0 : index
    %141 = vector.load %arg4[%c32, %c0_44] : memref<128x128xbf16, #tpu.memory_space<vmem>>, vector<32x128xbf16>
    %142 = arith.truncf %140 : vector<16x32xf32> to vector<16x32xbf16>
    %cst_45 = arith.constant dense<0.000000e+00> : vector<16x128xf32>
    %143 = tpu.matmul %142, %141, %cst_45 {dimension_numbers = #tpu.dot_dimension_numbers<[1], [0], [0], [1], [0, 0, 1, 1], [], []>} : vector<16x32xbf16>, vector<32x128xbf16>, vector<16x128xf32> -> vector<16x128xf32>
    %144 = arith.addf %139, %143 : vector<16x128xf32>
    %145 = tpu.concatenate %56, %116 in 0 : vector<8x32xf32>, vector<8x32xf32> -> vector<16x32xf32>
    %c64 = arith.constant 64 : index
    %c0_46 = arith.constant 0 : index
    %146 = vector.load %arg4[%c64, %c0_46] : memref<128x128xbf16, #tpu.memory_space<vmem>>, vector<32x128xbf16>
    %147 = arith.truncf %145 : vector<16x32xf32> to vector<16x32xbf16>
    %cst_47 = arith.constant dense<0.000000e+00> : vector<16x128xf32>
    %148 = tpu.matmul %147, %146, %cst_47 {dimension_numbers = #tpu.dot_dimension_numbers<[1], [0], [0], [1], [0, 0, 1, 1], [], []>} : vector<16x32xbf16>, vector<32x128xbf16>, vector<16x128xf32> -> vector<16x128xf32>
    %149 = arith.addf %144, %148 : vector<16x128xf32>
    %150 = tpu.concatenate %71, %131 in 0 : vector<8x32xf32>, vector<8x32xf32> -> vector<16x32xf32>
    %c96 = arith.constant 96 : index
    %c0_48 = arith.constant 0 : index
    %151 = vector.load %arg4[%c96, %c0_48] : memref<128x128xbf16, #tpu.memory_space<vmem>>, vector<32x128xbf16>
    %152 = arith.truncf %150 : vector<16x32xf32> to vector<16x32xbf16>
    %cst_49 = arith.constant dense<0.000000e+00> : vector<16x128xf32>
    %153 = tpu.matmul %152, %151, %cst_49 {dimension_numbers = #tpu.dot_dimension_numbers<[1], [0], [0], [1], [0, 0, 1, 1], [], []>} : vector<16x32xbf16>, vector<32x128xbf16>, vector<16x128xf32> -> vector<16x128xf32>
    %154 = arith.addf %149, %153 : vector<16x128xf32>
    %c0_50 = arith.constant 0 : index
    %c0_51 = arith.constant 0 : index
    %155 = vector.load %arg5[%c0_50, %c0_51] : memref<1x128xf32, #tpu.memory_space<vmem>>, vector<1x128xf32>
    %156 = vector.broadcast %155 : vector<1x128xf32> to vector<16x128xf32>
    %157 = arith.addf %154, %156 : vector<16x128xf32>
    %158 = arith.addf %0, %157 : vector<16x128xf32>
    %cst_52 = arith.constant dense<0.000000e+00> : vector<16xf32>
    %159 = vector.multi_reduction <add>, %158, %cst_52 [1] : vector<16x128xf32> to vector<16xf32>
    %160 = vector.shape_cast %159 : vector<16xf32> to vector<16x1xf32>
    %cst_53 = arith.constant 1.280000e+02 : f32
    %161 = vector.broadcast %cst_53 : f32 to vector<16x1xf32>
    %162 = arith.divf %160, %161 : vector<16x1xf32>
    %163 = vector.broadcast %162 : vector<16x1xf32> to vector<16x128xf32>
    %164 = arith.subf %158, %163 : vector<16x128xf32>
    %165 = arith.mulf %164, %164 : vector<16x128xf32>
    %cst_54 = arith.constant dense<0.000000e+00> : vector<16xf32>
    %166 = vector.multi_reduction <add>, %165, %cst_54 [1] : vector<16x128xf32> to vector<16xf32>
    %167 = vector.shape_cast %166 : vector<16xf32> to vector<16x1xf32>
    %cst_55 = arith.constant 1.280000e+02 : f32
    %168 = vector.broadcast %cst_55 : f32 to vector<16x1xf32>
    %169 = arith.divf %167, %168 : vector<16x1xf32>
    %170 = vector.broadcast %162 : vector<16x1xf32> to vector<16x128xf32>
    %171 = arith.subf %158, %170 : vector<16x128xf32>
    %cst_56 = arith.constant 9.99999996E-13 : f32
    %172 = vector.broadcast %cst_56 : f32 to vector<16x1xf32>
    %173 = arith.addf %169, %172 : vector<16x1xf32>
    %174 = math.rsqrt %173 : vector<16x1xf32>
    %175 = vector.broadcast %174 : vector<16x1xf32> to vector<16x128xf32>
    %176 = arith.mulf %171, %175 : vector<16x128xf32>
    %c0_57 = arith.constant 0 : index
    %c0_58 = arith.constant 0 : index
    %177 = vector.load %arg6[%c0_57, %c0_58] : memref<1x128xf32, #tpu.memory_space<vmem>>, vector<1x128xf32>
    %178 = vector.broadcast %177 : vector<1x128xf32> to vector<16x128xf32>
    %179 = arith.mulf %176, %178 : vector<16x128xf32>
    %c0_59 = arith.constant 0 : index
    %c0_60 = arith.constant 0 : index
    %180 = vector.load %arg7[%c0_59, %c0_60] : memref<1x128xf32, #tpu.memory_space<vmem>>, vector<1x128xf32>
    %181 = vector.broadcast %180 : vector<1x128xf32> to vector<16x128xf32>
    %182 = arith.addf %179, %181 : vector<16x128xf32>
    %c0_61 = arith.constant 0 : index
    %c0_62 = arith.constant 0 : index
    %183 = vector.load %arg8[%c0_61, %c0_62] : memref<16x128xf32, #tpu.memory_space<vmem>>, vector<16x128xf32>
    tpu.vector_store %arg8[%c0_61, %c0_62], %182 {strides = array<i32>} : memref<16x128xf32, #tpu.memory_space<vmem>>, vector<16x128xf32>,
    return
  }
  func.func @transform_0(%arg0: i32) -> (i32, i32) {
    %c0_i32 = arith.constant 0 : i32
    %c0_i32_0 = arith.constant 0 : i32
    %c0_i32_1 = arith.constant 0 : i32
    return %c0_i32, %c0_i32_0 : i32, i32
  }
  func.func @transform_1(%arg0: i32) -> (i32, i32) {
    %c0_i32 = arith.constant 0 : i32
    %c0_i32_0 = arith.constant 0 : i32
    %c0_i32_1 = arith.constant 0 : i32
    return %c0_i32, %c0_i32_0 : i32, i32
  }
  func.func @transform_2(%arg0: i32) -> (i32, i32) {
    %c0_i32 = arith.constant 0 : i32
    %c0_i32_0 = arith.constant 0 : i32
    %c0_i32_1 = arith.constant 0 : i32
    return %c0_i32, %c0_i32_0 : i32, i32
  }
  func.func @transform_3(%arg0: i32) -> (i32, i32) {
    %c0_i32 = arith.constant 0 : i32
    %c0_i32_0 = arith.constant 0 : i32
    %c0_i32_1 = arith.constant 0 : i32
    return %c0_i32, %c0_i32_0 : i32, i32
  }
  func.func @transform_4(%arg0: i32) -> (i32, i32) {
    %c0_i32 = arith.constant 0 : i32
    %c0_i32_0 = arith.constant 0 : i32
    %c0_i32_1 = arith.constant 0 : i32
    return %c0_i32, %c0_i32_0 : i32, i32
  }
  func.func @transform_5(%arg0: i32) -> (i32, i32) {
    %c0_i32 = arith.constant 0 : i32
    %c0_i32_0 = arith.constant 0 : i32
    %c0_i32_1 = arith.constant 0 : i32
    return %c0_i32, %c0_i32_0 : i32, i32
  }
  func.func @transform_6(%arg0: i32) -> (i32, i32) {
    %c0_i32 = arith.constant 0 : i32
    %c0_i32_0 = arith.constant 0 : i32
    %c0_i32_1 = arith.constant 0 : i32
    return %c0_i32, %c0_i32_0 : i32, i32
  }
  func.func @transform_7(%arg0: i32) -> (i32, i32) {
    %c0_i32 = arith.constant 0 : i32
    %c0_i32_0 = arith.constant 0 : i32
    %c0_i32_1 = arith.constant 0 : i32
    return %c0_i32, %c0_i32_0 : i32, i32
  }
  func.func @transform_8(%arg0: i32) -> (i32, i32) {
    %c0_i32 = arith.constant 0 : i32
    %c0_i32_0 = arith.constant 0 : i32
    %c0_i32_1 = arith.constant 0 : i32
    return %c0_i32, %c0_i32_0 : i32, i32
  }
}

</mosaic_0001>

<bundles_post_ra>
// kernel: albert_attention.1
= control target key start
LH: loop header
LB: loop body
LE: loop exit
PB: predicated region body
PF: predicated region fallthrough
CT: control target
= control target key end

     0   :  { %14 = vsyncpa [#allocation3], 0  ;;  %v2335_v2 = vmov 0   ;;  %s2728_s0 = inlined_call_operand.vmem [shape: f32[16,128], index: 0, kind: input, shape index: {}]   ;;  %s2729_s1 = inlined_call_operand.vmem [shape: bf16[128,384], index: 1, kind: input, shape index: {}]   ;;  %s2730_s2 = inlined_call_operand.vmem [shape: f32[1,384], index: 2, kind: input, shape index: {}]   ;;  %s2731_s3 = inlined_call_operand.vmem [shape: bf16[128,128], index: 3, kind: input, shape index: {}]   ;;  %s2732_s4 = inlined_call_operand.vmem [shape: f32[1,128], index: 4, kind: input, shape index: {}]   ;;  %s2733_s5 = inlined_call_operand.vmem [shape: f32[1,128], index: 5, kind: input, shape index: {}]   ;;  %s2734_s6 = inlined_call_operand.vmem [shape: f32[1,128], index: 6, kind: input, shape index: {}]   ;;  %s2735_s7 = inlined_call_operand.hbm [shape: f32[16,128], index: 7, kind: output, shape index: {0}]   ;;  %s2736_s8 = inlined_call_operand.hbm [shape: f32[64,8], index: 8, kind: output, shape index: {1}]  }
   0x1   :  { %v2211_v0 = vld [vmem:[%s2729_s1 + $0x4] ss:$12 sps:$4 sm:$0xff]   ;;  %v2213_v1 = vld [vmem:[%s2729_s1] ss:$12 sps:$4 sm:$0xff]   ;;  %243 = vmatprep.mubr.bf16.mxu0 %v2335_v2  ;;  %v2214_v3 = vld [vmem:[%s2729_s1 + $0x1c] ss:$12 sps:$4 sm:$0xff]  }
   0x2   :  { %211 = vmatprep.subr.bf16.mxu0 %v2211_v0  ;;  %v2216_v4 = vld [vmem:[%s2729_s1 + $0x18] ss:$12 sps:$4 sm:$0xff]   ;;  %v2217_v5 = vld [vmem:[%s2729_s1 + $0x34] ss:$12 sps:$4 sm:$0xff]   ;;  %v2219_v6 = vld [vmem:[%s2729_s1 + $0x30] ss:$12 sps:$4 sm:$0xff]  }
   0x3   :  { %212 = vmatpush1.bf16.msra.mxu0 %v2213_v1  ;;  %v2220_v7 = vld [vmem:[%s2729_s1 + $0x4c] ss:$12 sps:$4 sm:$0xff]   ;;  %v2222_v8 = vld [vmem:[%s2729_s1 + $0x48] ss:$12 sps:$4 sm:$0xff]   ;;  %v2223_v9 = vld [vmem:[%s2729_s1 + $0x64] ss:$12 sps:$4 sm:$0xff]  }
   0x4   :  { %213 = vmatprep.subr.bf16.mxu0 %v2214_v3  ;;  %v2225_v10 = vld [vmem:[%s2729_s1 + $0x60] ss:$12 sps:$4 sm:$0xff]   ;;  %v2226_v11 = vld [vmem:[%s2729_s1 + $0x7c] ss:$12 sps:$4 sm:$0xff]   ;;  %v2228_v12 = vld [vmem:[%s2729_s1 + $0x78] ss:$12 sps:$4 sm:$0xff]  }
   0x5   :  { %v2229_v13 = vld [vmem:[%s2729_s1 + $0x94] ss:$12 sps:$4 sm:$0xff]  }
   0x7   :  { %214 = vmatpush1.bf16.msra.mxu0 %v2216_v4 }
   0x8   :  { %215 = vmatprep.subr.bf16.mxu0 %v2217_v5 }
   0xb   :  { %216 = vmatpush1.bf16.msra.mxu0 %v2219_v6 }
   0xc   :  { %217 = vmatprep.subr.bf16.mxu0 %v2220_v7 }
   0xf   :  { %218 = vmatpush1.bf16.msra.mxu0 %v2222_v8 }
  0x10   :  { %219 = vmatprep.subr.bf16.mxu0 %v2223_v9 }
  0x13   :  { %220 = vmatpush1.bf16.msra.mxu0 %v2225_v10 }
  0x14   :  { %221 = vmatprep.subr.bf16.mxu0 %v2226_v11 }
  0x15   :  { %15 = vsyncpa [#allocation5], 0  ;;  %v2231_v14 = vld [vmem:[%s2729_s1 + $0x90] ss:$12 sps:$4 sm:$0xff]   ;;  %v2232_v15 = vld [vmem:[%s2729_s1 + $0xac] ss:$12 sps:$4 sm:$0xff]   ;;  %v68_v21 = vlaneseq }
  0x16   :  { %v2234_v16 = vld [vmem:[%s2729_s1 + $0xa8] ss:$12 sps:$4 sm:$0xff]   ;;  %v2441_v17 = vld [vmem:[%s2728_s0] sm:$0xff]  ;;  %v2336_v20 = vmov 0.0   ;;  %vm2337_vm0 = vmmov 0   ;;  %vm297_vm1 = vcmask 261120  }
  0x17   :  { %222 = vmatpush1.bf16.msra.mxu0 %v2228_v12  ;;  %v2446_v18 = vld [vmem:[%s2728_s0 + $0x8] sm:$0xff]  ;;  %2069 = vmatprep.subr.bf16.mxu1 %v2336_v20  ;;  %v2459_v22 = vshrl.u32 %v68_v21, 7  ;;  %v2466_v25 = vld [vmem:[%s2730_s2] sm:$0x7]  ;;  %s2338_s2 = smov 64   ;;  %s2339_s22 = smov 96  }
  0x18   :  { %223 = vmatprep.subr.bf16.mxu0 %v2229_v13  ;;  %v2450_v19 = vpack.c.bf16 %v2446_v18, %v2441_v17  ;;  %2085 = vmatprep.mubr.msk.bf16.mxu1 %vm2337_vm0, %v2336_v20  ;;  %v2235_v29 = vld [vmem:[%s2729_s1 + $0x8] ss:$12 sps:$4 sm:$0xff]   ;;  %v2236_v35 = vld [vmem:[%s2729_s1 + $0x20] ss:$12 sps:$4 sm:$0xff]   ;;  %v2237_v37 = vld [vmem:[%s2729_s1 + $0x38] ss:$12 sps:$4 sm:$0xff]  }
  0x19   :  { %v70_v23 = vsub.s32 0, %v2459_v22  ;;  %v74_v24 = vsub.s32 1, %v2459_v22  ;;  %2070 = vmatpush3.bf16.msra.mxu1 %v2235_v29  ;;  %s2340_s27 = smov 32   ;;  %v2238_v39 = vld [vmem:[%s2729_s1 + $0x50] ss:$12 sps:$4 sm:$0xff]   ;;  %vm374_vm2 = vcmask 64512  }
  0x1a   :  { %2071 = vmatprep.subr.bf16.mxu1 %v2336_v20  ;;  %v2239_v42 = vld [vmem:[%s2729_s1 + $0x68] ss:$12 sps:$4 sm:$0xff]   ;;  %v2240_v43 = vld [vmem:[%s2729_s1 + $0x80] ss:$12 sps:$4 sm:$0xff]   ;;  %v2241_v44 = vld [vmem:[%s2729_s1 + $0x98] ss:$12 sps:$4 sm:$0xff]  }
  0x1b   :  { %224 = vmatpush1.bf16.msra.mxu0 %v2231_v14  ;;  %v71_v26 = vrot.slane %v2466_v25, %v70_v23  ;;  %v75_v27 = vrot.slane %v2466_v25, %v74_v24  ;;  %v2242_v45 = vld [vmem:[%s2729_s1 + $0xb0] ss:$12 sps:$4 sm:$0xff]   ;;  %v78_v61 = vsub.s32 2, %v2459_v22 }
  0x1c   :  { %225 = vmatprep.subr.bf16.mxu0 %v2232_v15 }
  0x1d   :  { %2072 = vmatpush3.bf16.msra.mxu1 %v2236_v35  ;;  %v79_v62 = vrot.slane %v2466_v25, %v78_v61 }
  0x1e   :  { %2073 = vmatprep.subr.bf16.mxu1 %v2336_v20 }
  0x1f   :  { %226 = vmatpush1.bf16.msra.mxu0 %v2234_v16 }
  0x20   :  { %2089 = vmatprep.subr.mxu0 %v2336_v20 }
  0x21   :  { %2074 = vmatpush3.bf16.msra.mxu1 %v2237_v37 }
  0x22   :  { %244 = vmatmul.mubr.bf16.vlgmr.msra.gmra.mrb[0].mxu0 %v2450_v19  ;;  %2075 = vmatprep.subr.bf16.mxu1 %v2336_v20 }
  0x23   :  { %2091 = vmatprep.mubr.msk.f32.mxu0 %vm2337_vm0, %v2336_v20 }
  0x25   :  { %2076 = vmatpush3.bf16.msra.mxu1 %v2238_v39 }
  0x26   :  { %2077 = vmatprep.subr.bf16.mxu1 %v2336_v20 }
  0x29   :  { %2078 = vmatpush3.bf16.msra.mxu1 %v2239_v42 }
  0x2a   :  { %2079 = vmatprep.subr.bf16.mxu1 %v2336_v20 }
  0x2d   :  { %2080 = vmatpush3.bf16.msra.mxu1 %v2240_v43 }
  0x2e   :  { %2081 = vmatprep.subr.bf16.mxu1 %v2336_v20 }
  0x31   :  { %2082 = vmatpush3.bf16.msra.mxu1 %v2241_v44 }
  0x32   :  { %2083 = vmatprep.subr.bf16.mxu1 %v2336_v20 }
  0x35   :  { %2084 = vmatpush3.bf16.msra.mxu1 %v2242_v45 }
  0x36   :  { %2094 = vmatprep.subr.mxu1 %v2336_v20 }
  0x38   :  { %2086 = vmatmul.mubr.bf16.vlgmr.msra.gmra.mrb[0].mxu1 %v2450_v19 }
  0x39   :  { %2096 = vmatprep.mubr.msk.f32.mxu1 %vm2337_vm0, %v2336_v20 }
  0xf5   :  { %v245_v28 = vpop.f32.mrb[0].mxu0 }
  0xf6   :  { %v247_v30 = vpop.f32.mrb[1].mxu0  ;;  %v246_v31 = vadd.f32 %v245_v28, %v71_v26 }
  0xf7   :  { %v248_v32 = vadd.f32 %v247_v30, %v75_v27  ;;  %v249_v33 = vpop.f32.mrb[2].mxu0 }
  0xf8   :  { %v251_v34 = vpop.f32.mrb[3].mxu0  ;;  %v295_v36 = vmul.f32 0.17677669, %v246_v31  ;;  %v250_v38 = vadd.f32 %v249_v33, %v71_v26 }
  0xf9   :  { %627 = vrot.lane.b32.xlu1 %v248_v32, %s2338_s2  ;;  %461 = vrot.lane.b32.xlu0 %v248_v32, %s2339_s22  ;;  %v252_v41 = vadd.f32 %v251_v34, %v75_v27 }
  0xfa   :  { %2090 = vmatpush3.xpose.msk.msra.mxu0 %vm297_vm1, %v248_v32  ;;  %v296_v40 = vmul.f32 0.17677669, %v250_v38 }
  0xfb   :  { %2099 = vmatprep.subr.mxu0 %v2336_v20 }
  0xfd   :  { %2092 = vmatmul.mubr.msk.f32.vlgmr.msra.gmra.mrb[4].mxu0 %vm297_vm1, %v295_v36  ;;  %625 = vrot.lane.b32.xlu1 %v295_v36, %s2338_s2 }
  0xfe   :  { %459 = vrot.lane.b32.xlu0 %v295_v36, %s2339_s22  ;;  %2101 = vmatprep.mubr.msk.f32.mxu0 %vm2337_vm0, %v2336_v20 }
 0x101   :  { %790 = vrot.lane.b32.xlu1 %v295_v36, %s2340_s27 }
 0x102   :  { %792 = vrot.lane.b32.xlu0 %v248_v32, %s2340_s27 }
 0x105   :  { %1115 = vrot.lane.b32.xlu1 %v296_v40, %s2339_s22 }
 0x106   :  { %1117 = vrot.lane.b32.xlu0 %v252_v41, %s2339_s22 }
 0x109   :  { %1281 = vrot.lane.b32.xlu1 %v296_v40, %s2338_s2 }
 0x10a   :  { %1283 = vrot.lane.b32.xlu0 %v252_v41, %s2338_s2 }
 0x10b   :  { %v288_v63 = vpop.f32.mrb[0].mxu1 }
 0x10c   :  { %v2560_v0 = vadd.f32 %v288_v63, %v79_v62  ;;  %v2087_v1 = vpop.f32.mrb[1].mxu1 }
 0x10d   :  { %1446 = vrot.lane.b32.xlu1 %v296_v40, %s2340_s27  ;;  %v291_v2 = vpop.f32.mrb[2].mxu1 }
 0x10e   :  { %1448 = vrot.lane.b32.xlu0 %v252_v41, %s2340_s27  ;;  %2095 = vmatpush3.msra.mxu1 %v2560_v0  ;;  %v2564_v3 = vadd.f32 %v291_v2, %v79_v62  ;;  %v2088_v4 = vpop.f32.mrb[3].mxu1 }
 0x10f   :  { %2104 = vmatprep.subr.mxu1 %v2336_v20 }
 0x16b   :  { %v628_v46 = vpop.permute.xlu1 %627  ;;  %v462_v47 = vpop.permute.xlu0 %461 }
 0x16c   :  { %2100 = vmatpush3.xpose.msk.msra.mxu0 %vm297_vm1, %v462_v47 }
 0x16d   :  { %2109 = vmatprep.subr.mxu0 %v2336_v20 }
 0x16f   :  { %v626_v48 = vpop.permute.xlu1 %625 }
 0x170   :  { %v460_v49 = vpop.permute.xlu0 %459 }
 0x171   :  { %2102 = vmatmul.mubr.msk.f32.vlgmr.msra.gmra.mrb[6].mxu0 %vm297_vm1, %v460_v49 }
 0x172   :  { %2110 = vmatpush3.xpose.msk.msra.mxu0 %vm297_vm1, %v628_v46  ;;  %2111 = vmatprep.mubr.msk.f32.mxu0 %vm2337_vm0, %v2336_v20 }
 0x173   :  { %2119 = vmatprep.subr.mxu0 %v2336_v20  ;;  %v791_v51 = vpop.permute.xlu1 %790 }
 0x174   :  { %v793_v50 = vpop.permute.xlu0 %792 }
 0x175   :  { %2112 = vmatmul.mubr.msk.f32.vlgmr.msra.gmra.mrb[8].mxu0 %vm297_vm1, %v626_v48 }
 0x176   :  { %2120 = vmatpush3.xpose.msk.msra.mxu0 %vm297_vm1, %v793_v50  ;;  %2121 = vmatprep.mubr.msk.f32.mxu0 %vm2337_vm0, %v2336_v20 }
 0x177   :  { %2129 = vmatprep.subr.mxu0 %v2336_v20  ;;  %v1116_v53 = vpop.permute.xlu1 %1115 }
 0x178   :  { %v1118_v52 = vpop.permute.xlu0 %1117 }
 0x179   :  { %2122 = vmatmul.mubr.msk.f32.vlgmr.msra.gmra.mrb[10].mxu0 %vm297_vm1, %v791_v51 }
 0x17a   :  { %2130 = vmatpush3.xpose.msk.msra.mxu0 %vm297_vm1, %v252_v41  ;;  %2131 = vmatprep.mubr.msk.f32.mxu0 %vm2337_vm0, %v2336_v20 }
 0x17b   :  { %2139 = vmatprep.subr.mxu0 %v2336_v20  ;;  %v1282_v55 = vpop.permute.xlu1 %1281 }
 0x17c   :  { %v1284_v54 = vpop.permute.xlu0 %1283 }
 0x17d   :  { %2132 = vmatmul.mubr.msk.f32.vlgmr.msra.gmra.mrb[12].mxu0 %vm297_vm1, %v296_v40 }
 0x17e   :  { %2140 = vmatpush3.xpose.msk.msra.mxu0 %vm297_vm1, %v1118_v52  ;;  %2141 = vmatprep.mubr.msk.f32.mxu0 %vm2337_vm0, %v2336_v20 }
 0x17f   :  { %2149 = vmatprep.subr.mxu0 %v2336_v20  ;;  %v1447_v57 = vpop.permute.xlu1 %1446 }
 0x180   :  { %v1449_v56 = vpop.permute.xlu0 %1448 }
 0x181   :  { %2142 = vmatmul.mubr.msk.f32.vlgmr.msra.gmra.mrb[14].mxu0 %vm297_vm1, %v1116_v53 }
 0x182   :  { %2150 = vmatpush3.xpose.msk.msra.mxu0 %vm297_vm1, %v1284_v54  ;;  %2151 = vmatprep.mubr.msk.f32.mxu0 %vm2337_vm0, %v2336_v20 }
 0x183   :  { %2159 = vmatprep.subr.mxu0 %v2336_v20 }
 0x185   :  { %2152 = vmatmul.mubr.msk.f32.vlgmr.msra.gmra.mrb[16].mxu0 %vm297_vm1, %v1282_v55 }
 0x186   :  { %2160 = vmatpush3.xpose.msk.msra.mxu0 %vm297_vm1, %v1449_v56  ;;  %2161 = vmatprep.mubr.msk.f32.mxu0 %vm2337_vm0, %v2336_v20 }
 0x187   :  { %2169 = vmatprep.subr.bf16.mxu0 %v2336_v20 }
 0x189   :  { %2162 = vmatmul.mubr.msk.f32.vlgmr.msra.gmra.mrb[18].mxu0 %vm297_vm1, %v1447_v57 }
 0x18a   :  { %2173 = vmatprep.mubr.msk.bf16.mxu0 %vm2337_vm0, %v2336_v20 }
 0x1d0   :  { %v370_v58 = vpop.f32.mrb[4].mxu0 }
 0x1d1   :  { %v2093_v59 = vpop.f32.mrb[5].mxu0  ;;  %v375_v60 = vsel %vm374_vm2, %v370_v58, -inf }
 0x1d2   :  { %376 = vmax.xlane.f32.xlu0 %v375_v60 }
 0x244   :  { %v533_v5 = vpop.f32.mrb[6].mxu0 }
 0x245   :  { %v2103_v6 = vpop.f32.mrb[7].mxu0  ;;  %v537_v7 = vsel %vm374_vm2, %v533_v5, -inf }
 0x246   :  { %538 = vmax.xlane.f32.xlu1 %v537_v7 }
 0x248   :  { %v699_v8 = vpop.f32.mrb[8].mxu0 }
 0x249   :  { %v2113_v9 = vpop.f32.mrb[9].mxu0  ;;  %v703_v10 = vsel %vm374_vm2, %v699_v8, -inf }
 0x24a   :  { %704 = vmax.xlane.f32.xlu0 %v703_v10 }
 0x24c   :  { %v864_v11 = vpop.f32.mrb[10].mxu0 }
 0x24d   :  { %v2123_v12 = vpop.f32.mrb[11].mxu0  ;;  %v868_v13 = vsel %vm374_vm2, %v864_v11, -inf }
 0x24e   :  { %869 = vmax.xlane.f32.xlu0 %v868_v13 }
 0x250   :  { %v1027_v14 = vpop.f32.mrb[12].mxu0 }
 0x251   :  { %v2133_v15 = vpop.f32.mrb[13].mxu0  ;;  %v1031_v16 = vsel %vm374_vm2, %v1027_v14, -inf }
 0x252   :  { %1032 = vmax.xlane.f32.xlu1 %v1031_v16 }
 0x254   :  { %v1189_v19 = vpop.f32.mrb[14].mxu0 }
 0x255   :  { %v2143_v21 = vpop.f32.mrb[15].mxu0  ;;  %v1193_v22 = vsel %vm374_vm2, %v1189_v19, -inf }
 0x256   :  { %1194 = vmax.xlane.f32.xlu0 %v1193_v22 }
 0x258   :  { %v1355_v23 = vpop.f32.mrb[16].mxu0 }
 0x259   :  { %v2153_v24 = vpop.f32.mrb[17].mxu0  ;;  %v1359_v25 = vsel %vm374_vm2, %v1355_v23, -inf }
 0x25a   :  { %1360 = vmax.xlane.f32.xlu1 %v1359_v25 }
 0x25c   :  { %v1520_v26 = vpop.f32.mrb[18].mxu0 }
 0x25d   :  { %v2163_v27 = vpop.f32.mrb[19].mxu0  ;;  %v1524_v28 = vsel %vm374_vm2, %v1520_v26, -inf }
 0x25e   :  { %1525 = vmax.xlane.f32.xlu0 %v1524_v28 }
 0x25f   :  { %v377_v29 = vpop.xlane.xlu0 %376 }
 0x260   :  { %v378_v30 = vsub.f32 %v370_v58, %v377_v29 }
 0x262   :  { %v379_v31 = vmul.f32 1.442695, %v378_v30 }
 0x264   :  { %2251 = vpow2.f32 %v379_v31 }
 0x26b   :  { %714 = vrot.lane.b32.xlu1 %v2560_v0, %s2338_s2 }
 0x26e   :  { %v2252_v32 = vpop.eup %2251 }
 0x26f   :  { %v381_v33 = vsel %vm374_vm2, %v2252_v32, 0.0 }
 0x274   :  { %549 = vrot.lane.b32.xlu0 %v2560_v0, %s2339_s22 }
 0x28f   :  { %382 = vadd.xlane.f32.xlu1 %v381_v33 }
 0x2d3   :  { %v539_v34 = vpop.xlane.xlu1 %538 }
 0x2d4   :  { %v540_v35 = vsub.f32 %v533_v5, %v539_v34 }
 0x2d6   :  { %v541_v36 = vmul.f32 1.442695, %v540_v35 }
 0x2d7   :  { %v705_v37 = vpop.xlane.xlu0 %704 }
 0x2d8   :  { %2253 = vpow2.f32 %v541_v36  ;;  %v706_v38 = vsub.f32 %v699_v8, %v705_v37 }
 0x2da   :  { %v707_v39 = vmul.f32 1.442695, %v706_v38  ;;  %v2243_v38 = vld [vmem:[%s2731_s3] sm:$0xff]  }
 0x2db   :  { %v870_v40 = vpop.xlane.xlu0 %869 }
 0x2dc   :  { %2255 = vpow2.f32 %v707_v39  ;;  %v871_v41 = vsub.f32 %v864_v11, %v870_v40  ;;  %v2244_v39 = vld [vmem:[%s2731_s3 + $0x10] sm:$0xff]   ;;  %v2245_v40 = vld [vmem:[%s2731_s3 + $0x8] sm:$0xff]  }
 0x2dd   :  { %2170 = vmatpush3.bf16.msra.mxu0 %v2244_v39 }
 0x2de   :  { %v872_v42 = vmul.f32 1.442695, %v871_v41  ;;  %2171 = vmatprep.subr.bf16.mxu0 %v2336_v20  ;;  %v2246_v41 = vld [vmem:[%s2731_s3 + $0x18] sm:$0xff]  }
 0x2df   :  { %v1033_v43 = vpop.xlane.xlu1 %1032 }
 0x2e0   :  { %2257 = vpow2.f32 %v872_v42  ;;  %v1034_v44 = vsub.f32 %v1027_v14, %v1033_v43 }
 0x2e1   :  { %2172 = vmatpush3.bf16.msra.mxu0 %v2246_v41 }
 0x2e2   :  { %v2254_v45 = vpop.eup %2253  ;;  %v1035_v46 = vmul.f32 1.442695, %v1034_v44  ;;  %2185 = vmatprep.subr.bf16.mxu0 %v2336_v20 }
 0x2e3   :  { %v1195_v47 = vpop.xlane.xlu0 %1194  ;;  %v543_v48 = vsel %vm374_vm2, %v2254_v45, 0.0 }
 0x2e4   :  { %2259 = vpow2.f32 %v1035_v46  ;;  %v1196_v49 = vsub.f32 %v1189_v19, %v1195_v47  ;;  %544 = vadd.xlane.f32.xlu0 %v543_v48 }
 0x2e6   :  { %v2256_v50 = vpop.eup %2255  ;;  %v1197_v51 = vmul.f32 1.442695, %v1196_v49 }
 0x2e7   :  { %v709_v52 = vsel %vm374_vm2, %v2256_v50, 0.0  ;;  %v1361_v59 = vpop.xlane.xlu1 %1360 }
 0x2e8   :  { %2261 = vpow2.f32 %v1197_v51  ;;  %710 = vadd.xlane.f32.xlu1 %v709_v52  ;;  %v1362_v60 = vsub.f32 %v1355_v23, %v1361_v59  ;;  %v2248_v51 = vld [vmem:[%s2731_s3 + $0x30] sm:$0xff]   ;;  %v2249_v59 = vld [vmem:[%s2731_s3 + $0x28] sm:$0xff]  }
 0x2ea   :  { %v2258_v53 = vpop.eup %2257  ;;  %v1363_v62 = vmul.f32 1.442695, %v1362_v60 }
 0x2eb   :  { %v874_v54 = vsel %vm374_vm2, %v2258_v53, 0.0  ;;  %v1526_v61 = vpop.xlane.xlu0 %1525  ;;  %v715_v1 = vpop.permute.xlu1 %714 }
 0x2ec   :  { %875 = vadd.xlane.f32.xlu0 %v874_v54  ;;  %v1527_v63 = vsub.f32 %v1520_v26, %v1526_v61  ;;  %2263 = vpow2.f32 %v1363_v62 }
 0x2ee   :  { %v2581_v55 = vpop.eup %2259  ;;  %v1528_v2 = vmul.f32 1.442695, %v1527_v63 }
 0x2ef   :  { %v1037_v56 = vsel %vm374_vm2, %v2581_v55, 0.0  ;;  %v550_v10 = vpop.permute.xlu0 %549 }
 0x2f0   :  { %1038 = vadd.xlane.f32.xlu1 %v1037_v56  ;;  %2265 = vpow2.f32 %v1528_v2 }
 0x2f2   :  { %v2585_v57 = vpop.eup %2261 }
 0x2f3   :  { %v1199_v58 = vsel %vm374_vm2, %v2585_v57, 0.0 }
 0x2f4   :  { %1200 = vadd.xlane.f32.xlu0 %v1199_v58  ;;  %v2250_v58 = vld [vmem:[%s2731_s3 + $0x38] sm:$0xff]  }
 0x2f6   :  { %v2595_v5 = vpop.eup %2263 }
 0x2f7   :  { %v1365_v6 = vsel %vm374_vm2, %v2595_v5, 0.0 }
 0x301   :  { %1205 = vrot.lane.b32.xlu1 %v2564_v3, %s2339_s22 }
 0x30a   :  { %879 = vrot.lane.b32.xlu0 %v2560_v0, %s2340_s27  ;;  %v2599_v0 = vpop.eup %2265 }
 0x30b   :  { %v1530_v9 = vsel %vm374_vm2, %v2599_v0, 0.0 }
 0x30e   :  { %1370 = vrot.lane.b32.xlu0 %v2564_v3, %s2338_s2 }
 0x31c   :  { %v383_v4 = vpop.xlane.xlu1 %382 }
 0x31d   :  { %2267 = vrcp.f32 %v383_v4 }
 0x325   :  { %1366 = vadd.xlane.f32.xlu1 %v1365_v6 }
 0x327   :  { %v2268_v7 = vpop.eup %2267 }
 0x328   :  { %v385_v8 = vmul.f32 %v2268_v7, %v2252_v32 }
 0x329   :  { %1531 = vadd.xlane.f32.xlu1 %v1530_v9 }
 0x32a   :  { %1611 = vst.msk [vmem:[#allocation4] sm:$0xff] %vm374_vm2, %v385_v8  ;;  %2097 = vmatmul.mubr.msk.f32.vlgmr.msra.gmra.mrb[4].mxu1 %vm374_vm2, %v385_v8 }
 0x32b   :  { %2105 = vmatpush3.msra.mxu1 %v550_v10  ;;  %2106 = vmatprep.mubr.msk.f32.mxu1 %vm2337_vm0, %v2336_v20 }
 0x32c   :  { %2114 = vmatprep.subr.mxu1 %v2336_v20 }
 0x33a   :  { %1535 = vrot.lane.b32.xlu1 %v2564_v3, %s2340_s27 }
 0x371   :  { %v545_v11 = vpop.xlane.xlu0 %544 }
 0x372   :  { %2269 = vrcp.f32 %v545_v11 }
 0x375   :  { %v711_v12 = vpop.xlane.xlu1 %710 }
 0x376   :  { %2271 = vrcp.f32 %v711_v12 }
 0x379   :  { %v876_v13 = vpop.xlane.xlu0 %875 }
 0x37a   :  { %2273 = vrcp.f32 %v876_v13 }
 0x37c   :  { %v2270_v14 = vpop.eup %2269 }
 0x37d   :  { %v547_v15 = vmul.f32 %v2270_v14, %v2254_v45  ;;  %v1039_v16 = vpop.xlane.xlu1 %1038 }
 0x37e   :  { %2275 = vrcp.f32 %v1039_v16 }
 0x37f   :  { %1612 = vst.msk [vmem:[#allocation4 + $0x8] sm:$0xff] %vm374_vm2, %v547_v15  ;;  %2107 = vmatmul.mubr.msk.f32.vlgmr.msra.gmra.mrb[6].mxu1 %vm374_vm2, %v547_v15 }
 0x380   :  { %v2272_v19 = vpop.eup %2271  ;;  %2115 = vmatpush3.msra.mxu1 %v715_v1  ;;  %2116 = vmatprep.mubr.msk.f32.mxu1 %vm2337_vm0, %v2336_v20 }
 0x381   :  { %v713_v21 = vmul.f32 %v2272_v19, %v2256_v50  ;;  %v1201_v22 = vpop.xlane.xlu0 %1200  ;;  %2124 = vmatprep.subr.mxu1 %v2336_v20  ;;  %v1206_v28 = vpop.permute.xlu1 %1205 }
 0x382   :  { %2277 = vrcp.f32 %v1201_v22  ;;  %v2013_v22 = vld [vmem:[%s2732_s4] ss:$0 sm:$0xff]  ;;  %s2341_s4 = smov [#allocation4]  }
 0x383   :  { %1613 = vst.msk [vmem:[#allocation4 + $0x10] sm:$0xff] %vm374_vm2, %v713_v21  ;;  %2117 = vmatmul.mubr.msk.f32.vlgmr.msra.gmra.mrb[8].mxu1 %vm374_vm2, %v713_v21  ;;  %s1938_s30 = sshll.u32 %s2341_s4, 4  ;;  %s1939_s30 = int_to_ptr.vmem [resolvable:$true] %s1938_s30 }
 0x384   :  { %v2274_v23 = vpop.eup %2273  ;;  %2126 = vmatprep.mubr.msk.f32.mxu1 %vm2337_vm0, %v2336_v20  ;;  %s2287_s9 = scalar_lea.vmem %s1939_s30, 1024  ;;  %p2292_p1 = scmp.lt.s32.totalorder %s1939_s30, %s1939_s30 }
 0x385   :  { %v878_v24 = vmul.f32 %v2274_v23, %v2258_v53  ;;  %v880_v25 = vpop.permute.xlu0 %879  ;;  %p2288_p0 = scmp.ne.s32.totalorder %s1939_s30, %s2287_s9  ;;  %p2293_p2 = scmp.lt.s32.totalorder %s2287_s9, %s2287_s9 }
 0x386   :  { %2125 = vmatpush3.msra.mxu1 %v880_v25 }
 0x387   :  { %1614 = vst.msk [vmem:[#allocation4 + $0x18] sm:$0xff] %vm374_vm2, %v878_v24  ;;  %2127 = vmatmul.mubr.msk.f32.vlgmr.msra.gmra.mrb[10].mxu1 %vm374_vm2, %v878_v24  ;;  %2134 = vmatprep.subr.mxu1 %v2336_v20  ;;  %p2294_p3 = por %p2293_p2, %p2292_p1 }
 0x388   :  { %v2276_v26 = vpop.eup %2275  ;;  %2135 = vmatpush3.msra.mxu1 %v2564_v3  ;;  %2136 = vmatprep.mubr.msk.f32.mxu1 %vm2337_vm0, %v2336_v20 }
 0x389   :  { %v1041_v27 = vmul.f32 %v2276_v26, %v2581_v55  ;;  %2144 = vmatprep.subr.mxu1 %v2336_v20  ;;  %v1371_v3 = vpop.permute.xlu0 %1370  ;;  %v2247_v55 = vld [vmem:[%s2731_s3 + $0x20] sm:$0xff]   ;;  %p2295_p4 = pnand %p2294_p3, %p2288_p0 }
 0x38b   :  { %1615 = vst.msk [vmem:[#allocation4 + $0x20] sm:$0xff] %vm374_vm2, %v1041_v27  ;;  %2137 = vmatmul.mubr.msk.f32.vlgmr.msra.gmra.mrb[12].mxu1 %vm374_vm2, %v1041_v27 }
 0x38c   :  { %v2278_v29 = vpop.eup %2277  ;;  %2145 = vmatpush3.msra.mxu1 %v1206_v28  ;;  %2146 = vmatprep.mubr.msk.f32.mxu1 %vm2337_vm0, %v2336_v20 }
 0x38d   :  { %v1203_v30 = vmul.f32 %v2278_v29, %v2585_v57  ;;  %2154 = vmatprep.subr.mxu1 %v2336_v20 }
 0x38f   :  { %1616 = vst.msk [vmem:[#allocation4 + $0x28] sm:$0xff] %vm374_vm2, %v1203_v30  ;;  %2147 = vmatmul.mubr.msk.f32.vlgmr.msra.gmra.mrb[14].mxu1 %vm374_vm2, %v1203_v30 }
 0x390   :  { %2155 = vmatpush3.msra.mxu1 %v1371_v3  ;;  %2156 = vmatprep.mubr.msk.f32.mxu1 %vm2337_vm0, %v2336_v20 }
 0x391   :  { %2164 = vmatprep.subr.mxu1 %v2336_v20 }
 0x3b2   :  { %v1367_v31 = vpop.xlane.xlu1 %1366 }
 0x3b3   :  { %2279 = vrcp.f32 %v1367_v31 }
 0x3b6   :  { %v1532_v32 = vpop.xlane.xlu1 %1531 }
 0x3b7   :  { %2281 = vrcp.f32 %v1532_v32 }
 0x3ba   :  { %v1536_v35 = vpop.permute.xlu1 %1535 }
 0x3bd   :  { %v2280_v33 = vpop.eup %2279 }
 0x3be   :  { %v1369_v34 = vmul.f32 %v2280_v33, %v2595_v5 }
 0x3c0   :  { %1617 = vst.msk [vmem:[#allocation4 + $0x30] sm:$0xff] %vm374_vm2, %v1369_v34  ;;  %2157 = vmatmul.mubr.msk.f32.vlgmr.msra.gmra.mrb[16].mxu1 %vm374_vm2, %v1369_v34 }
 0x3c1   :  { %v2282_v36 = vpop.eup %2281  ;;  %2165 = vmatpush3.msra.mxu1 %v1536_v35  ;;  %2166 = vmatprep.mubr.msk.f32.mxu1 %vm2337_vm0, %v2336_v20 }
 0x3c2   :  { %v1534_v37 = vmul.f32 %v2282_v36, %v2599_v0  ;;  %2177 = vmatprep.subr.bf16.mxu1 %v2336_v20 }
 0x3c4   :  { %1618 = vst.msk [vmem:[#allocation4 + $0x38] sm:$0xff] %vm374_vm2, %v1534_v37  ;;  %2167 = vmatmul.mubr.msk.f32.vlgmr.msra.gmra.mrb[18].mxu1 %vm374_vm2, %v1534_v37 }
 0x3c5   :  { %2181 = vmatprep.mubr.msk.bf16.mxu1 %vm2337_vm0, %v2336_v20  ;;  %2178 = vmatpush3.bf16.msra.mxu1 %v2243_v38 }
 0x3c6   :  { %2179 = vmatprep.subr.bf16.mxu1 %v2336_v20 }
 0x3c9   :  { %2180 = vmatpush3.bf16.msra.mxu1 %v2245_v40 }
 0x3ca   :  { %2193 = vmatprep.subr.bf16.mxu1 %v2336_v20 }
 0x3fd   :  { %v455_v42 = vpop.f32.mrb[4].mxu1 }
 0x3fe   :  { %v2098_v43 = vpop.f32.mrb[5].mxu1 }
 0x452   :  { %v621_v44 = vpop.f32.mrb[6].mxu1 }
 0x453   :  { %v2108_v45 = vpop.f32.mrb[7].mxu1 }
 0x456   :  { %v786_v46 = vpop.f32.mrb[8].mxu1 }
 0x457   :  { %v2118_v47 = vpop.f32.mrb[9].mxu1 }
 0x45a   :  { %v951_v48 = vpop.f32.mrb[10].mxu1 }
 0x45b   :  { %v2128_v49 = vpop.f32.mrb[11].mxu1 }
 0x45e   :  { %v1111_v50 = vpop.f32.mrb[12].mxu1 }
 0x45f   :  { %v1623_v52 = vpack.c.bf16 %v1111_v50, %v455_v42  ;;  %v2138_v53 = vpop.f32.mrb[13].mxu1 }
 0x461   :  { %2182 = vmatmul.mubr.msk.bf16.vlgmr.msra.gmra.mrb[20].mxu1 %vm297_vm1, %v1623_v52 }
 0x462   :  { %v1277_v54 = vpop.f32.mrb[14].mxu1  ;;  %2194 = vmatpush3.bf16.msra.mxu1 %v2248_v51  ;;  %2197 = vmatprep.mubr.msk.bf16.mxu1 %vm2337_vm0, %v2336_v20 }
 0x463   :  { %v1628_v56 = vpack.c.bf16 %v1277_v54, %v621_v44  ;;  %v2148_v57 = vpop.f32.mrb[15].mxu1  ;;  %2195 = vmatprep.subr.bf16.mxu1 %v2336_v20 }
 0x465   :  { %2174 = vmatmul.mubr.msk.bf16.vlgmr.msra.gmra.mrb[20].mxu0 %vm297_vm1, %v1628_v56 }
 0x466   :  { %2186 = vmatpush3.bf16.msra.mxu0 %v2247_v55  ;;  %2189 = vmatprep.mubr.msk.bf16.mxu0 %vm2337_vm0, %v2336_v20 }
 0x467   :  { %2187 = vmatprep.subr.bf16.mxu0 %v2336_v20  ;;  %2196 = vmatpush3.bf16.msra.mxu1 %v2250_v58 }
 0x46a   :  { %2188 = vmatpush3.bf16.msra.mxu0 %v2249_v59 }
 0x493   :  { %v1442_v60 = vpop.f32.mrb[16].mxu1 }
 0x494   :  { %v1745_v61 = vpack.c.bf16 %v1442_v60, %v786_v46  ;;  %v2158_v62 = vpop.f32.mrb[17].mxu1 }
 0x496   :  { %2190 = vmatmul.mubr.msk.bf16.vlgmr.msra.gmra.mrb[24].mxu0 %vm297_vm1, %v1745_v61 }
 0x497   :  { %v1607_v63 = vpop.f32.mrb[18].mxu1 }
 0x498   :  { %v1808_v1 = vpack.c.bf16 %v1607_v63, %v951_v48  ;;  %v2168_v2 = vpop.f32.mrb[19].mxu1 }
 0x49a   :  { %2198 = vmatmul.mubr.msk.bf16.vlgmr.msra.gmra.mrb[24].mxu1 %vm297_vm1, %v1808_v1 }
 0x534   :  { %v1734_v4 = vpop.f32.mrb[20].mxu1 }
 0x535   :  { %v2183_v5 = vpop.f32.mrb[21].mxu1 }
 0x536   :  { %v1737_v6 = vpop.f32.mrb[22].mxu1 }
 0x537   :  { %v2184_v0 = vpop.f32.mrb[23].mxu1 }
 0x538   :  { %v1678_v7 = vpop.f32.mrb[20].mxu0 }
 0x539   :  { %v1735_v8 = vadd.f32 %v1734_v4, %v1678_v7  ;;  %v2175_v9 = vpop.f32.mrb[21].mxu0 }
 0x53a   :  { %v1681_v20 = vpop.f32.mrb[22].mxu0 }
 0x53b   :  { %v1738_v10 = vadd.f32 %v1737_v6, %v1681_v20  ;;  %v2176_v11 = vpop.f32.mrb[23].mxu0 }
 0x569   :  { %v1795_v12 = vpop.f32.mrb[24].mxu0 }
 0x56a   :  { %v1802_v13 = vadd.f32 %v1795_v12, %v1735_v8  ;;  %v2191_v14 = vpop.f32.mrb[25].mxu0 }
 0x56b   :  { %v1798_v15 = vpop.f32.mrb[26].mxu0 }
 0x56c   :  { %v1803_v16 = vadd.f32 %v1798_v15, %v1738_v10  ;;  %v2192_v19 = vpop.f32.mrb[27].mxu0 }
 0x56d   :  { %v1858_v21 = vpop.f32.mrb[24].mxu1 }
 0x56e   :  { %v1865_v23 = vadd.f32 %v1858_v21, %v1802_v13  ;;  %v2199_v24 = vpop.f32.mrb[25].mxu1 }
 0x56f   :  { %v1861_v25 = vpop.f32.mrb[26].mxu1 }
 0x570   :  { %v1874_v26 = vadd.f32 %v2013_v22, %v1865_v23  ;;  %v1866_v27 = vadd.f32 %v1861_v25, %v1803_v16  ;;  %v2200_v28 = vpop.f32.mrb[27].mxu1 }
 0x572   :  { %v1875_v29 = vadd.f32 %v2013_v22, %v1866_v27  ;;  %v1876_v30 = vadd.f32 %v1874_v26, %v2441_v17 }
 0x574   :  { %1878 = vadd.xlane.f32.xlu0 %v1876_v30  ;;  %v1877_v3 = vadd.f32 %v1875_v29, %v2446_v18 }
 0x576   :  { %1880 = vadd.xlane.f32.xlu1 %v1877_v3 }
 0x601   :  { %v1879_v31 = vpop.xlane.xlu0 %1878 }
 0x602   :  { %v1883_v32 = vmul.f32 0.0078125, %v1879_v31 }
 0x603   :  { %v1881_v33 = vpop.xlane.xlu1 %1880 }
 0x604   :  { %v1885_v34 = vsub.f32 %v1876_v30, %v1883_v32  ;;  %v1884_v35 = vmul.f32 0.0078125, %v1881_v33 }
 0x606   :  { %v1886_v36 = vsub.f32 %v1877_v3, %v1884_v35  ;;  %v1887_v37 = vmul.f32 %v1885_v34, %v1885_v34 }
 0x608   :  { %1889 = vadd.xlane.f32.xlu0 %v1887_v37  ;;  %v1888_v38 = vmul.f32 %v1886_v36, %v1886_v36 }
 0x60c   :  { %1891 = vadd.xlane.f32.xlu0 %v1888_v38 }
 0x60d   :  { %2298 = shalt.err (!%p2295_p4)
}
 0x60e   :  { %s2299_s12 = scalar_lea.hbm %s2736_s8, 1024 }
 0x60f   :  { %p2300_p5 = scmp.ne.s32.totalorder %s2736_s8, %s2299_s12  ;;  %p2303_p6 = scmp.lt.u32.totalorder %s2299_s12, %s2736_s8 }
 0x611   :  { %p2305_p7 = pnand %p2303_p6, %p2300_p5 }
 0x613   :  { %2308 = shalt.err (!%p2305_p7)
}
 0x614   :  { %s2342_s16 = smov 128   ;;  %s2343_s17 = smov 8   ;;  %v2014_v44 = vld [vmem:[%s2733_s5] ss:$0 sm:$0xff] }
 0x615   :  { %1944 = dma.vmem_to_hbm [thread:$0]  %s1939_s30, 1024, %s2736_s8, [#allocation5], %s2342_s16, %s2342_s16, %s2343_s17  }
 0x616   :  { %v2015_v46 = vld [vmem:[%s2734_s6] ss:$0 sm:$0xff]  ;;  %s2344_s8 = smov [#allocation2]  }
 0x617   :  { %s1926_s22 = sshll.u32 %s2344_s8, 4  ;;  %s1927_s22 = int_to_ptr.vmem [resolvable:$true] %s1926_s22 }
 0x618   :  { %s2309_s23 = scalar_lea.vmem %s1927_s22, 256  ;;  %p2314_p9 = scmp.lt.s32.totalorder %s1927_s22, %s1927_s22 }
 0x619   :  { %p2310_p8 = scmp.ne.s32.totalorder %s1927_s22, %s2309_s23  ;;  %p2315_p10 = scmp.lt.s32.totalorder %s2309_s23, %s2309_s23 }
 0x61b   :  { %p2316_p11 = por %p2315_p10, %p2314_p9 }
 0x61d   :  { %p2317_p12 = pnand %p2316_p11, %p2310_p8 }
 0x695   :  { %v1890_v17 = vpop.xlane.xlu0 %1889 }
 0x696   :  { %v1893_v18 = vmul.f32 0.0078125, %v1890_v17 }
 0x698   :  { %v1895_v39 = vadd.f32 1e-12, %v1893_v18 }
 0x699   :  { %v1892_v40 = vpop.xlane.xlu0 %1891 }
 0x69a   :  { %2283 = vrsqrt.f32 %v1895_v39  ;;  %v1894_v41 = vmul.f32 0.0078125, %v1892_v40 }
 0x69c   :  { %v1896_v42 = vadd.f32 1e-12, %v1894_v41 }
 0x69e   :  { %2285 = vrsqrt.f32 %v1896_v42 }
 0x6a4   :  { %v2284_v43 = vpop.eup %2283 }
 0x6a5   :  { %v1899_v45 = vmul.f32 %v2284_v43, %v1885_v34 }
 0x6a7   :  { %v1908_v47 = vmul.f32 %v2014_v44, %v1899_v45 }
 0x6a8   :  { %v2286_v48 = vpop.eup %2285 }
 0x6a9   :  { %v1900_v49 = vmul.f32 %v2286_v48, %v1886_v36  ;;  %v1917_v50 = vadd.f32 %v2015_v46, %v1908_v47 }
 0x6ab   :  { %v1909_v51 = vmul.f32 %v2014_v44, %v1900_v49  ;;  %1919 = vst [vmem:[#allocation2] sm:$0xff] %v1917_v50 }
 0x6ad   :  { %v1918_v52 = vadd.f32 %v2015_v46, %v1909_v51 }
 0x6af   :  { %1920 = vst [vmem:[#allocation2 + $0x8] sm:$0xff] %v1918_v52 }
 0x6b0   :  { %2320 = shalt.err (!%p2317_p12)
}
 0x6b1   :  { %s2321_s24 = scalar_lea.hbm %s2735_s7, 256 }
 0x6b2   :  { %p2322_p13 = scmp.ne.s32.totalorder %s2735_s7, %s2321_s24  ;;  %p2325_p0 = scmp.lt.u32.totalorder %s2321_s24, %s2735_s7 }
 0x6b4   :  { %p2327_p1 = pnand %p2325_p0, %p2322_p13 }
 0x6b6   :  { %2330 = shalt.err (!%p2327_p1)
}
 0x6b7   :  { %1932 = dma.vmem_to_hbm [thread:$0]  %s1927_s22, 256, %s2735_s7, [#allocation3], %s2342_s16, %s2342_s16, %s2343_s17  }
 0x6b8   :  { %2331 = dma.done.wait [#allocation3], 256  }
 0x6b9   :  { %2332 = vsyncadd [#allocation3], 4294967040 }
 0x6ba   :  { %2333 = dma.done.wait [#allocation5], 1024  }
 0x6bb   :  { %2334 = vsyncadd [#allocation5], 4294966272 }
 0x6bc   :  { %1951 = vsyncpa [#allocation3], 1 }
 0x6bd   :  { %1952 = vsyncpa [#allocation5], 1 }

</bundles_post_ra>
